<compile_context>
chip_gen: v6e
topology: v6e:2x2x1
jax: 0.10.0
libtpu: 0.0.40
codegen_flags: <defaults>
</compile_context>

<pallas_src>
import functools

import jax
import jax.numpy as jnp
from jax import lax
from jax.experimental import pallas as pl
from jax.experimental.pallas import tpu as pltpu


def _gate_act_kernel(x_ref, w_ref, o_ref, *, matmul_dtype=None):
    # x_ref : (tm, D)   row tile of activations, full contraction (K == D) dim
    # w_ref : (tn, D)   rows of the nn.Linear weight for this output-column block
    # o_ref : (tm, tn)  gated output tile
    x = x_ref[...]

    if matmul_dtype is not None:
        a = x.astype(matmul_dtype)
        b = w_ref[...].astype(matmul_dtype)
    else:
        a = x
        b = w_ref[...]

    # x @ W^T for this column block: contract the last dim of both operands
    # (trans-B); f32 accumulation on the MXU.
    g = lax.dot_general(
        a,
        b,
        dimension_numbers=(((1,), (1,)), ((), ())),
        preferred_element_type=jnp.float32,
    )
    gate = jax.nn.sigmoid(g)  # f32, routed to the EUP

    tn = o_ref.shape[1]
    if tn == x_ref.shape[1]:
        # Resident-weight path: x tile lines up with the output tile.
        x_cols = x
    else:
        # Column-tiled path (large D): matching, lane-aligned feature columns.
        j = pl.program_id(1)
        start = pl.multiple_of(j * tn, 128)
        x_cols = x_ref[:, pl.ds(start, tn)]

    # Multiply in f32; single cast at the store.
    o_ref[...] = (x_cols.astype(jnp.float32) * gate).astype(o_ref.dtype)


def _min_sublane(dtype) -> int:
    # Minimum second-to-last tile dim for a dtype (f32: 8, bf16: 16, int8/fp8: 32).
    return {4: 8, 2: 16, 1: 32}.get(jnp.dtype(dtype).itemsize, 8)


def gate_activation(
    x,
    w,
    *,
    tm: int = 256,
    matmul_dtype=None,
    max_weight_tile_bytes=None,
    max_x_tile_bytes=None,
):
    """out = x * sigmoid(x @ w.T); w is the (out, in) = (D, D) nn.Linear weight.

    `matmul_dtype=jnp.bfloat16` casts BOTH matmul operands in-kernel (f32
    accumulation, f32 elementwise gate) for bf16 MXU rate on v6e/v7x; the
    default (None) is bit-faithful to the PyTorch module.
    """
    orig_shape = x.shape
    D = orig_shape[-1]
    assert w.shape == (D, D), f"gate weight must be (D, D), got {w.shape}"
    x2 = x.reshape(-1, D)
    M = x2.shape[0]

    x_bytes = jnp.dtype(x.dtype).itemsize
    w_bytes = jnp.dtype(w.dtype).itemsize
    out_bytes = x_bytes
    sub = _min_sublane(x.dtype)

    # ---- VMEM budget from the actual chip, with headroom for Mosaic scratch ----
    try:
        vmem_cap = int(pltpu.get_tpu_info().vmem_capacity_bytes)
    except Exception:
        vmem_cap = 64 << 20  # conservative default (v7x per-TC size)
    usable_vmem = max(32 << 20, vmem_cap - (16 << 20))
    if max_weight_tile_bytes is None:
        max_weight_tile_bytes = usable_vmem // 2
    if max_x_tile_bytes is None:
        max_x_tile_bytes = usable_vmem // 6

    # ---- row tile: large by default, shrunk only for tiny M or huge D ----
    m_rounded = M + (-M) % sub
    tm_eff = max(sub, (min(tm, m_rounded) // sub) * sub)
    while tm_eff > sub and tm_eff * D * x_bytes > max_x_tile_bytes:
        tm_eff //= 2
    tm_eff = max(sub, (tm_eff // sub) * sub)
    grid_m = pl.cdiv(M, tm_eff)  # ragged last block: Pallas masks reads/writes

    # ---- output-column (weight-row) tile ----
    w_resident = (D * D * w_bytes <= max_weight_tile_bytes) or (D % 128 != 0)
    if w_resident:
        tn_eff = D
    else:
        # 256-multiple N tiles keep the 256-wide MXU (v6e/v7x) full; must divide D.
        n_gran = 256 if D % 256 == 0 else 128
        nb_total = D // n_gran
        max_blocks = max(1, int((max_weight_tile_bytes // (D * w_bytes)) // n_gran))
        t = min(max_blocks, nb_total)
        while nb_total % t != 0:
            t -= 1
        tn_eff = n_gran * t
    grid_n = D // tn_eff
    grid = (grid_m, grid_n)

    # ---- VMEM sizing (W single-buffered when its block index is constant) ----
    w_bufs = 1 if grid_n == 1 else 2
    vmem_need = (
        2 * tm_eff * D * x_bytes
        + w_bufs * tn_eff * D * w_bytes
        + 2 * tm_eff * tn_eff * out_bytes
        + 2 * tm_eff * tn_eff * 4  # f32 matmul / gate temporaries
    )
    vmem_limit = int(min(usable_vmem, max(32 << 20, int(1.25 * vmem_need))))

    # ---- scheduler hint: W is re-streamed once per row tile when column-tiled ----
    w_streams = 1 if grid_n == 1 else grid_m
    cost = pl.CostEstimate(
        flops=2 * M * D * D,
        transcendentals=M * D,
        bytes_accessed=2 * M * D * x_bytes + w_streams * D * D * w_bytes,
    )

    if grid_n == 1:
        # Constant block index across the whole grid -> single-buffer W.
        w_spec = pl.BlockSpec(
            (tn_eff, D), lambda i, j: (0, 0), pipeline_mode=pl.Buffered(1)
        )
    else:
        w_spec = pl.BlockSpec((tn_eff, D), lambda i, j: (j, 0))

    kernel = functools.partial(_gate_act_kernel, matmul_dtype=matmul_dtype)

    out = pl.pallas_call(
        kernel,
        out_shape=jax.ShapeDtypeStruct((M, D), x.dtype),
        grid_spec=pltpu.PrefetchScalarGridSpec(
            num_scalar_prefetch=0,
            grid=grid,
            in_specs=[
                pl.BlockSpec((tm_eff, D), lambda i, j: (i, 0)),  # x row tile (full K)
                w_spec,                                           # W rows for col block
            ],
            out_specs=pl.BlockSpec((tm_eff, tn_eff), lambda i, j: (i, j)),
        ),
        compiler_params=pltpu.CompilerParams(
            dimension_semantics=("parallel", "parallel"),
            vmem_limit_bytes=vmem_limit,
        ),
        cost_estimate=cost,
    )(x2, w)

    return out.reshape(orig_shape)


if __name__ == "__main__":
    # Small shapes consistent with the module: batch=2, seq=8, hidden=32.
    B, S, D = 2, 8, 32
    key = jax.random.PRNGKey(0)
    kx, kw = jax.random.split(key)

    x = jax.random.normal(kx, (B, S, D), dtype=jnp.float32)
    # Deterministic "nn.Linear(in_dim, in_dim, bias=False)" weight, shape (D, D).
    w = jax.random.normal(kw, (D, D), dtype=jnp.float32) * (1.0 / jnp.sqrt(D))

    out = gate_activation(x, w)
    out = jax.block_until_ready(out)

    # Reference check in plain JAX (same math as the PyTorch module).
    ref = x * jax.nn.sigmoid(jnp.einsum("bsd,ed->bse", x, w))
    assert out.shape == (B, S, D)
    assert jnp.allclose(out, ref, atol=1e-5, rtol=1e-5)

    print("KERNEL_OK")
</pallas_src>

<mosaic_0001>
module attributes {stable_mosaic.version = 11 : i64} {
  func.func @_gate_act_kernel(%arg0: i32, %arg1: i32, %arg2: memref<16x32xf32, #tpu.memory_space<vmem>>, %arg3: memref<32x32xf32, #tpu.memory_space<vmem>>, %arg4: memref<16x32xf32, #tpu.memory_space<vmem>>) attributes {dimension_semantics = [#tpu.dimension_semantics<parallel>, #tpu.dimension_semantics<parallel>], iteration_bounds = array<i64: 1, 1>, scalar_prefetch = 0 : i64, scratch_operands = 0 : i64, tpu.core_type = #tpu.core_type<tc>, window_params = [{transform_indices = @transform_0, window_bounds = array<i64: 16, 32>}, {pipeline_mode = #tpu.pipeline_mode<synchronous>, transform_indices = @transform_1, window_bounds = array<i64: 32, 32>}, {transform_indices = @transform_2, window_bounds = array<i64: 16, 32>}]} {
    %c0 = arith.constant 0 : index
    %c0_0 = arith.constant 0 : index
    %0 = vector.load %arg2[%c0, %c0_0] : memref<16x32xf32, #tpu.memory_space<vmem>>, vector<16x32xf32>
    %c0_1 = arith.constant 0 : index
    %c0_2 = arith.constant 0 : index
    %1 = vector.load %arg3[%c0_1, %c0_2] : memref<32x32xf32, #tpu.memory_space<vmem>>, vector<32x32xf32>
    %cst = arith.constant dense<0.000000e+00> : vector<16x32xf32>
    %2 = tpu.matmul %0, %1, %cst {dimension_numbers = #tpu.dot_dimension_numbers<[1], [1], [0], [0], [0, 0, 1, 0], [], []>} : vector<16x32xf32>, vector<32x32xf32>, vector<16x32xf32> -> vector<16x32xf32>
    %3 = arith.negf %2 : vector<16x32xf32>
    %4 = math.exp %3 : vector<16x32xf32>
    %cst_3 = arith.constant 1.000000e+00 : f32
    %5 = vector.broadcast %cst_3 : f32 to vector<16x32xf32>
    %6 = arith.addf %5, %4 : vector<16x32xf32>
    %7 = arith.divf %5, %6 : vector<16x32xf32>
    %8 = arith.mulf %0, %7 : vector<16x32xf32>
    %c0_4 = arith.constant 0 : index
    %c0_5 = arith.constant 0 : index
    %9 = vector.load %arg4[%c0_4, %c0_5] : memref<16x32xf32, #tpu.memory_space<vmem>>, vector<16x32xf32>
    tpu.vector_store %arg4[%c0_4, %c0_5], %8 {strides = array<i32>} : memref<16x32xf32, #tpu.memory_space<vmem>>, vector<16x32xf32>,
    return
  }
  func.func @transform_0(%arg0: i32, %arg1: i32) -> (i32, i32) {
    %c0_i32 = arith.constant 0 : i32
    %c0_i32_0 = arith.constant 0 : i32
    return %arg0, %c0_i32 : i32, i32
  }
  func.func @transform_1(%arg0: i32, %arg1: i32) -> (i32, i32) {
    %c0_i32 = arith.constant 0 : i32
    %c0_i32_0 = arith.constant 0 : i32
    %c0_i32_1 = arith.constant 0 : i32
    return %c0_i32, %c0_i32_0 : i32, i32
  }
  func.func @transform_2(%arg0: i32, %arg1: i32) -> (i32, i32) {
    %c0_i32 = arith.constant 0 : i32
    return %arg0, %arg1 : i32, i32
  }
}

</mosaic_0001>

<bundles_post_ra>
// kernel: tpu_custom_call.1
= control target key start
LH: loop header
LB: loop body
LE: loop exit
PB: predicated region body
PF: predicated region fallthrough
CT: control target
= control target key end

     0   :  { %7 = vsyncpa [#allocation3], 0  ;;  %s328_s0 = inlined_call_operand.hbm [shape: f32[16,32], index: 0, kind: input, shape index: {}]   ;;  %s329_s1 = inlined_call_operand.hbm [shape: f32[32,32], index: 1, kind: input, shape index: {}]   ;;  %s330_s2 = inlined_call_operand.hbm [shape: f32[16,32], index: 2, kind: output, shape index: {}]  }
   0x1   :  { %8 = vsyncpa [#allocation6], 0 }
   0x2   :  { %9 = vsyncpa [#allocation4], 0  ;;  %s278_s9 = smov [#allocation2]  }
   0x3   :  { %s15_s10 = sshll.u32 %s278_s9, 4  ;;  %s16_s10 = int_to_ptr.vmem [resolvable:$true] %s15_s10 }
   0x4   :  { %s220_s11 = scalar_lea.vmem %s16_s10, 256  ;;  %p225_p1 = scmp.lt.s32.totalorder %s16_s10, %s16_s10 }
   0x5   :  { %p221_p0 = scmp.ne.s32.totalorder %s16_s10, %s220_s11  ;;  %p226_p2 = scmp.lt.s32.totalorder %s220_s11, %s220_s11 }
   0x7   :  { %p227_p3 = por %p226_p2, %p225_p1 }
   0x9   :  { %p228_p4 = pnand %p227_p3, %p221_p0 }
   0xb   :  { %231 = shalt.err (!%p228_p4)
}
   0xc   :  { %s279_s12 = smov 128   ;;  %s280_s13 = smov 8  }
   0xd   :  { %21 = dma.hbm_to_vmem [thread:$0]  %s328_s0, 256, %s16_s10, [#allocation3], %s279_s12, %s279_s12, %s280_s13  }
   0xe   :  { %s281_s16 = smov [#allocation5]  }
   0xf   :  { %s27_s17 = sshll.u32 %s281_s16, 4  ;;  %s28_s17 = int_to_ptr.vmem [resolvable:$true] %s27_s17 }
  0x10   :  { %s240_s18 = scalar_lea.vmem %s28_s17, 512  ;;  %p245_p6 = scmp.lt.s32.totalorder %s28_s17, %s28_s17 }
  0x11   :  { %p241_p5 = scmp.ne.s32.totalorder %s28_s17, %s240_s18  ;;  %p246_p7 = scmp.lt.s32.totalorder %s240_s18, %s240_s18 }
  0x13   :  { %p247_p8 = por %p246_p7, %p245_p6 }
  0x15   :  { %p248_p9 = pnand %p247_p8, %p241_p5 }
  0x17   :  { %251 = shalt.err (!%p248_p9)
}
  0x18   :  { %33 = dma.hbm_to_vmem [thread:$0]  %s329_s1, 512, %s28_s17, [#allocation6], %s279_s12, %s279_s12, %s280_s13  }
  0x19   :  { %272 = dma.done.wait [#allocation3], 256  }
  0x1a   :  { %273 = vsyncadd [#allocation3], 4294967040 }
  0x1b   :  { %274 = dma.done.wait [#allocation6], 512  }
  0x1c   :  { %275 = vsyncadd [#allocation6], 4294966784  ;;  %vm46_vm0 = vcmask 261120   ;;  %v45_v0 = vld [vmem:[#allocation5 + $0x18] sm:$0xff]  ;;  %v44_v1 = vld [vmem:[#allocation5 + $0x10] sm:$0xff]  ;;  %s282_s0 = smov [#allocation7]  }
  0x1d   :  { %188 = vmatprep.subr.msk.mxu0 %vm46_vm0, %v45_v0  ;;  %v40_v2 = vld [vmem:[#allocation2] sm:$0xff]  ;;  %v43_v3 = vld [vmem:[#allocation5 + $0x8] sm:$0xff]  ;;  %v42_v4 = vld [vmem:[#allocation5] sm:$0xff]  ;;  %s161_s1 = sshll.u32 %s282_s0, 4  ;;  %s162_s1 = int_to_ptr.vmem [resolvable:$true] %s161_s1 }
  0x1e   :  { %189 = vmatpush3.xpose.msk.msra.mxu0 %vm46_vm0, %v45_v0  ;;  %196 = vmatprep.mubr.msk.f32.mxu0 %vm46_vm0, %v40_v2  ;;  %v41_v5 = vld [vmem:[#allocation2 + $0x8] sm:$0xff]  ;;  %s252_s21 = scalar_lea.vmem %s162_s1, 256  ;;  %p257_p11 = scmp.lt.s32.totalorder %s162_s1, %s162_s1 }
  0x1f   :  { %190 = vmatprep.subr.msk.mxu0 %vm46_vm0, %v44_v1  ;;  %p253_p10 = scmp.ne.s32.totalorder %s162_s1, %s252_s21  ;;  %p258_p12 = scmp.lt.s32.totalorder %s252_s21, %s252_s21 }
  0x21   :  { %p259_p13 = por %p258_p12, %p257_p11 }
  0x22   :  { %191 = vmatpush3.xpose.msk.msra.mxu0 %vm46_vm0, %v44_v1 }
  0x23   :  { %192 = vmatprep.subr.msk.mxu0 %vm46_vm0, %v43_v3  ;;  %p260_p0 = pnand %p259_p13, %p253_p10 }
  0x26   :  { %193 = vmatpush3.xpose.msk.msra.mxu0 %vm46_vm0, %v43_v3 }
  0x27   :  { %194 = vmatprep.subr.msk.mxu0 %vm46_vm0, %v42_v4 }
  0x2a   :  { %195 = vmatpush3.xpose.msk.msra.mxu0 %vm46_vm0, %v42_v4 }
  0x2d   :  { %197 = vmatmul.mubr.msk.f32.vlgmr.msra.gmra.mxu0 %vm46_vm0, %v41_v5 }
  0xed   :  { %v198_v6 = vpop.f32.mrf.mxu0 }
  0xee   :  { %v181_v7 = vmul.f32 -1.442695, %v198_v6 }
  0xef   :  { %v131_v8 = vpop.f32.mrf.mxu0 }
  0xf0   :  { %204 = vpow2.f32 %v181_v7  ;;  %v180_v9 = vmul.f32 -1.442695, %v131_v8 }
  0xf2   :  { %206 = vpow2.f32 %v180_v9 }
  0xfd   :  { %v205_v10 = vpop.eup %204 }
  0xfe   :  { %v147_v11 = vadd.f32 1.0, %v205_v10 }
  0xff   :  { %v207_v12 = vpop.eup %206 }
 0x100   :  { %208 = vrcp.f32 %v147_v11  ;;  %v146_v13 = vadd.f32 1.0, %v207_v12 }
 0x102   :  { %210 = vrcp.f32 %v146_v13 }
 0x10d   :  { %v209_v14 = vpop.eup %208 }
 0x10e   :  { %v153_v15 = vmul.f32 %v209_v14, %v41_v5 }
 0x10f   :  { %v211_v16 = vpop.eup %210 }
 0x110   :  { %v152_v17 = vmul.f32 %v211_v16, %v40_v2  ;;  %155 = vst.msk [vmem:[#allocation7 + $0x8] sm:$0xff] %vm46_vm0, %v153_v15 }
 0x112   :  { %154 = vst.msk [vmem:[#allocation7] sm:$0xff] %vm46_vm0, %v152_v17 }
 0x113   :  { %263 = shalt.err (!%p260_p0)
}
 0x114   :  { %167 = dma.vmem_to_hbm [thread:$0]  %s162_s1, 256, %s330_s2, [#allocation4], %s279_s12, %s279_s12, %s280_s13  }
 0x115   :  { %276 = dma.done.wait [#allocation4], 256  }
 0x116   :  { %277 = vsyncadd [#allocation4], 4294967040 }
 0x117   :  { %171 = vsyncpa [#allocation3], 1 }
 0x118   :  { %172 = vsyncpa [#allocation6], 1 }
 0x119   :  { %173 = vsyncpa [#allocation4], 1 }

</bundles_post_ra>
